<compile_context>
chip_gen: v7x
topology: tpu7x:2x2x1
jax: 0.10.0
libtpu: 0.0.40
codegen_flags: <defaults>
</compile_context>

<pallas_src>
import math

import jax
import jax.numpy as jnp
from jax.experimental import pallas as pl
from jax.experimental.pallas import tpu as pltpu

_LANES = 128


def _frame_similarly_kernel(x_ref, o_ref):
    # x_ref / o_ref: (N, TR, 128) or (N, TL) tile holding all frames for this
    # slab.  out = x^2 * sum_over_frames(x).  The reduction is over axis 0
    # only, so garbage lanes/rows read in a partial edge block stay at their
    # own (row, lane) positions and are masked out on the store.
    x = x_ref[...]
    xf = x.astype(jnp.float32)                       # no-op for f32 inputs
    s = jnp.sum(xf, axis=0, keepdims=True)
    o_ref[...] = (xf * xf * s).astype(o_ref.dtype)


def _vmem_budget():
    """Generation-aware VMEM budgeting.

    Returns (working_set_bytes, vmem_limit_bytes):
      v5e / v6e (128 MiB physical VMEM): ws = 48 MiB, limit = 64 MiB
      v7x        (64 MiB physical VMEM): ws = 32 MiB, limit = 48 MiB
    """
    try:
        cap = int(pltpu.get_tpu_info().vmem_capacity_bytes)
    except Exception:
        cap = 64 << 20  # conservative fallback (v7x-sized)
    ws = min(cap // 2, 48 << 20)
    limit = min(ws + (16 << 20), (cap * 3) // 4)
    return ws, limit


def _sublane_align(itemsize):
    # Sub-32-bit dtypes pack along sublanes: 8 rows f32, 16 bf16/f16, 32 int8.
    return max(8, 32 // max(1, itemsize))


def _max_block_elems(n_rows, itemsize, ws_bytes):
    """Largest per-row element count per block such that the double-buffered
    in+out pipeline blocks plus ~3 full-block f32 temporaries fit in ws."""
    per_elem = n_rows * (4 * itemsize + 3 * 4)
    return max(1, ws_bytes // per_elem)


def _pick_r_tile(n, r, itemsize, ws_bytes, min_steps=4):
    """R-tile for the dense [N, R, 128] path."""
    align = _sublane_align(itemsize)
    max_tr = _max_block_elems(n, itemsize, ws_bytes) // _LANES
    max_tr = max(align, (max_tr // align) * align)
    tr = min(r, max_tr)
    # >= min_steps grid steps when possible: 2 per TensorCore on v7x megacore
    # and enough steps for the auto-pipeline to overlap DMA with compute.
    if r // min_steps >= align:
        tr = min(tr, ((r // min_steps) // align) * align)
    return max(align, tr)


def _pick_l_tile(n, total, itemsize, ws_bytes, min_steps=4):
    """Lane-tile for the ragged [N, total] path (TL multiple of 128, or the
    full extent when a single block covers everything)."""
    align = _sublane_align(itemsize)
    n_pad = pl.cdiv(n, align) * align            # VMEM sublane-tiling padding
    max_tl = _max_block_elems(n_pad, itemsize, ws_bytes)
    tl = max(_LANES, (max_tl // _LANES) * _LANES)
    if total // min_steps >= _LANES:
        tl = min(tl, ((total // min_steps) // _LANES) * _LANES)
    if tl >= total:
        return total    # single block == full array extent (always legal)
    return tl


def frame_similarly(frames):
    """frames: [N, C, H, W] array. Returns the stacked [N, C, H, W] result
    (equivalent to the PyTorch list of per-frame tensors):
        out[i] = frames[i]**2 * sum_j frames[j]
    """
    n = frames.shape[0]
    total = math.prod(frames.shape[1:])
    itemsize = frames.dtype.itemsize
    ws, vmem_limit = _vmem_budget()

    compiler_params = pltpu.CompilerParams(
        dimension_semantics=("parallel",),       # tiles fully independent
        vmem_limit_bytes=vmem_limit,
    )
    cost = pl.CostEstimate(
        flops=3 * n * total,
        transcendentals=0,
        bytes_accessed=2 * n * total * itemsize,
    )

    if total % _LANES == 0:
        # Dense path: free reshape to a lane-dense [N, R, 128] slab.
        r = total // _LANES
        flat = frames.reshape(n, r, _LANES)
        tr = _pick_r_tile(n, r, itemsize, ws)
        out_flat = pl.pallas_call(
            _frame_similarly_kernel,
            out_shape=jax.ShapeDtypeStruct((n, r, _LANES), frames.dtype),
            grid_spec=pltpu.PrefetchScalarGridSpec(
                num_scalar_prefetch=0,
                grid=(pl.cdiv(r, tr),),
                in_specs=[pl.BlockSpec((n, tr, _LANES), lambda i: (0, i, 0))],
                out_specs=pl.BlockSpec((n, tr, _LANES), lambda i: (0, i, 0)),
            ),
            compiler_params=compiler_params,
            cost_estimate=cost,
        )(flat)
    else:
        # Ragged path: keep the flat [N, total] slab un-padded; Pallas masks
        # the partial edge block (no jnp.pad / output-slice HBM copies).
        flat = frames.reshape(n, total)
        tl = _pick_l_tile(n, total, itemsize, ws)
        out_flat = pl.pallas_call(
            _frame_similarly_kernel,
            out_shape=jax.ShapeDtypeStruct((n, total), frames.dtype),
            grid_spec=pltpu.PrefetchScalarGridSpec(
                num_scalar_prefetch=0,
                grid=(pl.cdiv(total, tl),),
                in_specs=[pl.BlockSpec((n, tl), lambda i: (0, i))],
                out_specs=pl.BlockSpec((n, tl), lambda i: (0, i)),
            ),
            compiler_params=compiler_params,
            cost_estimate=cost,
        )(flat)

    return out_flat.reshape(frames.shape)


if __name__ == "__main__":
    key = jax.random.PRNGKey(0)

    # Main test: 4 frames of [4, 16, 16] -> 1024 elems/frame (dense 128 path).
    N, C, H, W = 4, 4, 16, 16
    frames = jax.random.normal(key, (N, C, H, W), dtype=jnp.float32)
    out = frame_similarly(frames)
    jax.block_until_ready(out)
    ref = frames ** 2 * jnp.sum(frames, axis=0, keepdims=True)
    assert out.shape == (N, C, H, W)
    assert jnp.allclose(out, ref, atol=1e-5, rtol=1e-5), "mismatch (dense path)"

    # Ragged test: 3 frames of [3, 10, 10] -> 300 elems/frame (not a multiple
    # of 128) exercises the edge-masked path on hardware.
    frames2 = jax.random.normal(jax.random.PRNGKey(1), (3, 3, 10, 10),
                                dtype=jnp.float32)
    out2 = frame_similarly(frames2)
    jax.block_until_ready(out2)
    ref2 = frames2 ** 2 * jnp.sum(frames2, axis=0, keepdims=True)
    assert out2.shape == frames2.shape
    assert jnp.allclose(out2, ref2, atol=1e-5, rtol=1e-5), "mismatch (ragged path)"

    print("KERNEL_OK")
</pallas_src>

<mosaic_0001>
module attributes {stable_mosaic.version = 11 : i64} {
  func.func @_frame_similarly_kernel(%arg0: i32, %arg1: memref<4x8x128xf32, #tpu.memory_space<vmem>>, %arg2: memref<4x8x128xf32, #tpu.memory_space<vmem>>) attributes {dimension_semantics = [#tpu.dimension_semantics<parallel>], iteration_bounds = array<i64: 1>, scalar_prefetch = 0 : i64, scratch_operands = 0 : i64, tpu.core_type = #tpu.core_type<tc>, window_params = [{transform_indices = @transform_0, window_bounds = array<i64: 4, 8, 128>}, {transform_indices = @transform_1, window_bounds = array<i64: 4, 8, 128>}]} {
    %c0 = arith.constant 0 : index
    %c0_0 = arith.constant 0 : index
    %c0_1 = arith.constant 0 : index
    %0 = vector.load %arg1[%c0, %c0_0, %c0_1] : memref<4x8x128xf32, #tpu.memory_space<vmem>>, vector<4x8x128xf32>
    %cst = arith.constant dense<0.000000e+00> : vector<8x128xf32>
    %1 = vector.multi_reduction <add>, %0, %cst [0] : vector<4x8x128xf32> to vector<8x128xf32>
    %2 = vector.shape_cast %1 : vector<8x128xf32> to vector<1x8x128xf32>
    %3 = arith.mulf %0, %0 : vector<4x8x128xf32>
    %4 = vector.broadcast %2 : vector<1x8x128xf32> to vector<4x8x128xf32>
    %5 = arith.mulf %3, %4 : vector<4x8x128xf32>
    %c0_2 = arith.constant 0 : index
    %c0_3 = arith.constant 0 : index
    %c0_4 = arith.constant 0 : index
    %6 = vector.load %arg2[%c0_2, %c0_3, %c0_4] : memref<4x8x128xf32, #tpu.memory_space<vmem>>, vector<4x8x128xf32>
    tpu.vector_store %arg2[%c0_2, %c0_3, %c0_4], %5 {strides = array<i32>} : memref<4x8x128xf32, #tpu.memory_space<vmem>>, vector<4x8x128xf32>,
    return
  }
  func.func @transform_0(%arg0: i32) -> (i32, i32, i32) {
    %c0_i32 = arith.constant 0 : i32
    %c0_i32_0 = arith.constant 0 : i32
    %c0_i32_1 = arith.constant 0 : i32
    return %c0_i32, %arg0, %c0_i32_0 : i32, i32, i32
  }
  func.func @transform_1(%arg0: i32) -> (i32, i32, i32) {
    %c0_i32 = arith.constant 0 : i32
    %c0_i32_0 = arith.constant 0 : i32
    %c0_i32_1 = arith.constant 0 : i32
    return %c0_i32, %arg0, %c0_i32_0 : i32, i32, i32
  }
}

</mosaic_0001>

<bundles_post_ra>
// kernel: tpu_custom_call.1
= control target key start
LH: loop header
LB: loop body
LE: loop exit
PB: predicated region body
PF: predicated region fallthrough
CT: control target
= control target key end

     0   :  { %6 = vsyncpa [#allocation3], 0  ;;  %s155_s0 = inlined_call_operand.hbm [shape: f32[4,8,128], index: 0, kind: input, shape index: {}]   ;;  %s156_s1 = inlined_call_operand.hbm [shape: f32[4,8,128], index: 1, kind: output, shape index: {}]  }
   0x1   :  { %7 = vsyncpa [#allocation4], 0  ;;  %s111_s6 = smov [#allocation2]   ;;  %s63_s10 = scalar_lea.hbm %s155_s0, 512 }
   0x2   :  { %s13_s7 = sshll.u32 %s111_s6, 4  ;;  %p64_p0 = scmp.ne.s32.totalorder %s155_s0, %s63_s10  ;;  %s14_s7 = int_to_ptr.vmem [resolvable:$true] %s13_s7 }
   0x3   :  { %p67_p1 = scmp.lt.u32.totalorder %s63_s10, %s155_s0 }
   0x5   :  { %p69_p2 = pnand %p67_p1, %p64_p0 }
   0x7   :  { %72 = shalt.err (!%p69_p2)
}
   0x8   :  { %s73_s15 = scalar_lea.vmem %s14_s7, 512  ;;  %p78_p4 = scmp.lt.s32.totalorder %s14_s7, %s14_s7 }
   0x9   :  { %p74_p3 = scmp.ne.s32.totalorder %s14_s7, %s73_s15  ;;  %p79_p5 = scmp.lt.s32.totalorder %s73_s15, %s73_s15 }
   0xb   :  { %p80_p6 = por %p79_p5, %p78_p4 }
   0xd   :  { %p81_p7 = pnand %p80_p6, %p74_p3 }
   0xf   :  { %84 = shalt.err (!%p81_p7)
}
  0x10   :  { %s112_s16 = smov 128   ;;  %s113_s17 = smov 8  }
  0x11   :  { %19 = dma.hbm_to_vmem [thread:$0]  %s155_s0, 512, %s14_s7, [#allocation3], %s112_s16, %s112_s16, %s113_s17  }
  0x12   :  { %107 = dma.done.wait [#allocation3], 512  }
  0x13   :  { %108 = vsyncadd [#allocation3], 4294966784  ;;  %v23_v0 = vld [vmem:[#allocation2] sm:$0xff]  ;;  %v24_v1 = vld [vmem:[#allocation2 + $0x8] sm:$0xff]  ;;  %s114_s20 = smov [#allocation5]  }
  0x14   :  { %v25_v2 = vld [vmem:[#allocation2 + $0x10] sm:$0xff]  ;;  %v26_v3 = vld [vmem:[#allocation2 + $0x18] sm:$0xff]  ;;  %v27_v4 = vadd.f32 %v24_v1, %v23_v0  ;;  %v30_v5 = vmul.f32 %v23_v0, %v23_v0  ;;  %v31_v7 = vmul.f32 %v24_v1, %v24_v1  ;;  %s47_s21 = sshll.u32 %s114_s20, 4  ;;  %s48_s21 = int_to_ptr.vmem [resolvable:$true] %s47_s21 }
  0x15   :  { %v32_v8 = vmul.f32 %v25_v2, %v25_v2  ;;  %v33_v9 = vmul.f32 %v26_v3, %v26_v3  ;;  %s85_s0 = scalar_lea.vmem %s48_s21, 512  ;;  %p90_p9 = scmp.lt.s32.totalorder %s48_s21, %s48_s21 }
  0x16   :  { %v28_v6 = vadd.f32 %v27_v4, %v25_v2  ;;  %p86_p8 = scmp.ne.s32.totalorder %s48_s21, %s85_s0  ;;  %p91_p10 = scmp.lt.s32.totalorder %s85_s0, %s85_s0 }
  0x18   :  { %v29_v10 = vadd.f32 %v28_v6, %v26_v3  ;;  %p92_p11 = por %p91_p10, %p90_p9 }
  0x1a   :  { %v34_v11 = vmul.f32 %v30_v5, %v29_v10  ;;  %v35_v12 = vmul.f32 %v31_v7, %v29_v10  ;;  %v36_v13 = vmul.f32 %v32_v8, %v29_v10  ;;  %v37_v14 = vmul.f32 %v33_v9, %v29_v10  ;;  %p93_p12 = pnand %p92_p11, %p86_p8 }
  0x1c   :  { %38 = vst [vmem:[#allocation5] sm:$0xff] %v34_v11  ;;  %39 = vst [vmem:[#allocation5 + $0x8] sm:$0xff] %v35_v12 }
  0x1d   :  { %40 = vst [vmem:[#allocation5 + $0x10] sm:$0xff] %v36_v13  ;;  %41 = vst [vmem:[#allocation5 + $0x18] sm:$0xff] %v37_v14 }
  0x1e   :  { %96 = shalt.err (!%p93_p12)
}
  0x1f   :  { %s97_s24 = scalar_lea.hbm %s156_s1, 512 }
  0x20   :  { %p98_p13 = scmp.ne.s32.totalorder %s156_s1, %s97_s24  ;;  %p101_p0 = scmp.lt.u32.totalorder %s97_s24, %s156_s1 }
  0x22   :  { %p103_p1 = pnand %p101_p0, %p98_p13 }
  0x24   :  { %106 = shalt.err (!%p103_p1)
}
  0x25   :  { %53 = dma.vmem_to_hbm [thread:$0]  %s48_s21, 512, %s156_s1, [#allocation4], %s112_s16, %s112_s16, %s113_s17  }
  0x26   :  { %109 = dma.done.wait [#allocation4], 512  }
  0x27   :  { %110 = vsyncadd [#allocation4], 4294966784 }
  0x28   :  { %57 = vsyncpa [#allocation3], 1 }
  0x29   :  { %58 = vsyncpa [#allocation4], 1 }

</bundles_post_ra>
